<compile_context>
chip_gen: v6e
topology: v6e:2x2x1
jax: 0.10.0
libtpu: 0.0.40
codegen_flags: <defaults>
</compile_context>

<pallas_src>
import functools
import math

import jax
import jax.numpy as jnp
from jax import lax
from jax.experimental import pallas as pl
from jax.experimental.pallas import tpu as pltpu


def _flash_attn_kernel(x_ref, q_ref, k_ref, vaug_ref, o_ref, m_scr, l_scr,
                       *, ones_row, n_keys, mask_keys, exp_in_bf16):
    """One (batch, q-tile) x kv-tile step of self-attention in (C, N) layout."""
    kv_idx = pl.program_id(2)
    tkv = k_ref.shape[-1]
    C = o_ref.shape[0]

    @pl.when(kv_idx == 0)
    def _init():
        m_scr[...] = jnp.full(m_scr.shape, -jnp.inf, jnp.float32)
        l_scr[...] = jnp.zeros(l_scr.shape, jnp.float32)
        o_ref[...] = jnp.zeros(o_ref.shape, o_ref.dtype)

    # Logits s[j, i] = k_j . q_i -> (tkv, tq): contract the (zero-padded) channel
    # axis of both bf16 operands on the MXU; no transpose materialization.
    s = lax.dot_general(k_ref[...], q_ref[...], (((0,), (0,)), ((), ())),
                        preferred_element_type=jnp.float32)

    if mask_keys:
        # Keys beyond the true sequence length (N padded up to a tile multiple)
        # get -inf logits -> their exp is exactly 0.
        key_pos = kv_idx * tkv + lax.broadcasted_iota(jnp.int32, s.shape, 0)
        s = jnp.where(key_pos < n_keys, s, -jnp.inf)

    # Online softmax over the kv axis (axis 0); m / l bookkeeping strictly f32.
    m_prev = m_scr[...]
    m_new = jnp.maximum(m_prev, jnp.max(s, axis=0, keepdims=True))      # (1, tq)
    alpha = jnp.exp(m_prev - m_new)                                      # (1, tq)
    if exp_in_bf16:
        p = jnp.exp((s - m_new).astype(jnp.bfloat16))   # bf16 EUP on v6e/v7x
    else:
        p = jnp.exp(s - m_new).astype(jnp.bfloat16)     # f32 EUP on v5e

    # One MXU matmul produces both the unnormalized output rows and (via the ones
    # row of v_aug at `ones_row`) the softmax-denominator increment sum_j p[j, i].
    pv = jnp.dot(vaug_ref[...], p, preferred_element_type=jnp.float32)   # (Caug, tq)
    l_scr[...] = alpha * l_scr[...] + pv[ones_row:ones_row + 1]
    o_ref[...] = alpha * o_ref[...] + pv[:C]
    m_scr[...] = m_new

    @pl.when(kv_idx == pl.num_programs(2) - 1)
    def _finalize():
        # Deferred softmax normalization (approx reciprocal -> EUP) + residual.
        inv_l = pl.reciprocal(l_scr[...], approx=True)                   # (1, tq)
        o_ref[...] = (o_ref[...] * inv_l + x_ref[...]).astype(o_ref.dtype)


def _round_up(n, m):
    return ((n + m - 1) // m) * m


def _device_kind():
    try:
        return jax.devices()[0].device_kind.lower()
    except Exception:
        return ""


def _pick_tile(n_padded_128, cap):
    for c in (1024, 512, 256, 128):
        if c <= cap and c <= n_padded_128:
            return c
    return 128


def self_attention(x_nchw, params, *, block_q=None, block_kv=None):
    """Forward pass matching the PyTorch module.  x_nchw: (B, C, H, W) float32."""
    B, C, H, W = x_nchw.shape
    N = H * W
    C8 = C // 8
    assert C8 >= 1, "in_channels must be >= 8"

    kind = _device_kind()
    is_v7 = "v7" in kind
    exp_in_bf16 = ("v6" in kind) or ("v7" in kind)   # keep f32 exp on v5e (no bf16 EUP)

    # Tile sizes: bigger tiles -> less kv re-streaming & amortized grid overhead.
    # Cap at 512 on v7x (64 MiB VMEM), 1024 on v5e/v6e (128 MiB VMEM).
    cap = 512 if is_v7 else 1024
    n128 = _round_up(N, 128)
    tq = block_q or _pick_tile(n128, cap)
    tkv = block_kv or _pick_tile(n128, cap)
    Np = _round_up(N, math.lcm(tq, tkv))

    # Native layout, no transpose: (B, C, N) is a free view of NCHW (lane dim = N).
    x = x_nchw.reshape(B, C, N)
    f32 = jnp.float32
    wq, bq = params["wq"], params["bq"]      # torch Conv2d(1x1) layout: (Cout, Cin)
    wk, bk = params["wk"], params["bk"]
    wv, bv = params["wv"], params["bv"]

    # 1x1-conv projections computed ONCE in plain XLA (hoisted out of the flash
    # kernel so they are not redone per q-tile); f32 math, bf16 streamed operands.
    q = jnp.einsum("oc,bcn->bon", wq, x) + bq[None, :, None]   # (B, C8, N)
    k = jnp.einsum("oc,bcn->bon", wk, x) + bk[None, :, None]   # (B, C8, N)
    v = jnp.einsum("oc,bcn->bon", wv, x) + bv[None, :, None]   # (B, C,  N)

    # Channel padding: q/k padded to a sublane multiple (zero rows contribute 0 to
    # the logits); v augmented with a `ones` row at a sublane-aligned offset so the
    # softmax denominator falls out of the p@v matmul.
    C8a = _round_up(C8, 8)
    ones_row = _round_up(C, 8)
    Caug = ones_row + 8

    def pad_n(a):   # zero-pad the spatial axis up to Np
        return a if Np == N else jnp.pad(a, ((0, 0), (0, 0), (0, Np - N)))

    q_p = pad_n(jnp.zeros((B, C8a, N), f32).at[:, :C8].set(q)).astype(jnp.bfloat16)
    k_p = pad_n(jnp.zeros((B, C8a, N), f32).at[:, :C8].set(k)).astype(jnp.bfloat16)
    v_aug = (jnp.zeros((B, Caug, N), f32)
             .at[:, :C].set(v)
             .at[:, ones_row].set(1.0))
    v_aug = pad_n(v_aug).astype(jnp.bfloat16)
    x_p = pad_n(x)                                             # f32 residual stream

    grid = (B, Np // tq, Np // tkv)
    kernel = functools.partial(
        _flash_attn_kernel, ones_row=ones_row, n_keys=N,
        mask_keys=(Np != N), exp_in_bf16=exp_in_bf16)

    # Generation-aware VMEM budget: ~75% of physical (≈96 MiB on v5e/v6e, ≈48 MiB
    # on v7x) rather than a hard-coded 64 MiB that equals v7x's entire VMEM.
    try:
        vmem_limit = int(pltpu.get_tpu_info().vmem_capacity_bytes * 3 // 4)
    except Exception:
        vmem_limit = 48 * 1024 * 1024

    out = pl.pallas_call(
        kernel,
        out_shape=jax.ShapeDtypeStruct((B, C, Np), x.dtype),
        grid_spec=pltpu.PrefetchScalarGridSpec(
            num_scalar_prefetch=0,
            grid=grid,
            in_specs=[
                # residual (f32): fetched once per (b, q-tile)
                pl.BlockSpec((pl.Squeezed(), C, tq), lambda b, qi, kv: (b, 0, qi)),
                # projected q (bf16): fetched once per (b, q-tile)
                pl.BlockSpec((pl.Squeezed(), C8a, tq), lambda b, qi, kv: (b, 0, qi)),
                # projected k / [v ; ones] (bf16): the per-kv-step streams
                pl.BlockSpec((pl.Squeezed(), C8a, tkv), lambda b, qi, kv: (b, 0, kv)),
                pl.BlockSpec((pl.Squeezed(), Caug, tkv), lambda b, qi, kv: (b, 0, kv)),
            ],
            out_specs=pl.BlockSpec((pl.Squeezed(), C, tq),
                                   lambda b, qi, kv: (b, 0, qi)),
            scratch_shapes=[
                pltpu.VMEM((1, tq), jnp.float32),   # running max m
                pltpu.VMEM((1, tq), jnp.float32),   # running sum l
            ],
        ),
        compiler_params=pltpu.CompilerParams(
            dimension_semantics=("parallel", "parallel", "arbitrary"),
            vmem_limit_bytes=vmem_limit),
    )(x_p, q_p, k_p, v_aug)

    if Np != N:
        out = out[:, :, :N]
    return out.reshape(B, C, H, W)


def init_params(key, C):
    """Deterministic synthetic weights, stored exactly like torch Conv2d(C, Cout, 1):
    weight (Cout, Cin) (1x1 kernel squeezed), bias (Cout,)."""
    C8 = C // 8
    k1, k2, k3, k4, k5, k6 = jax.random.split(key, 6)
    s = 0.1
    return {
        "wq": s * jax.random.normal(k1, (C8, C), jnp.float32),
        "bq": s * jax.random.normal(k4, (C8,), jnp.float32),
        "wk": s * jax.random.normal(k2, (C8, C), jnp.float32),
        "bk": s * jax.random.normal(k5, (C8,), jnp.float32),
        "wv": s * jax.random.normal(k3, (C, C), jnp.float32),
        "bv": s * jax.random.normal(k6, (C,), jnp.float32),
    }


def self_attention_ref(x_nchw, params):
    """Plain-JAX f32 reference mirroring the PyTorch forward exactly."""
    B, C, H, W = x_nchw.shape
    N = H * W
    x = x_nchw.reshape(B, C, N)                          # (B, C, N)
    q = jnp.einsum("oc,bcn->bon", params["wq"], x) + params["bq"][None, :, None]
    k = jnp.einsum("oc,bcn->bon", params["wk"], x) + params["bk"][None, :, None]
    v = jnp.einsum("oc,bcn->bon", params["wv"], x) + params["bv"][None, :, None]
    att = jax.nn.softmax(jnp.einsum("bci,bcj->bij", q, k), axis=-1)   # (B, N, N)
    out = jnp.einsum("bcj,bij->bci", v, att)             # (B, C, N)
    return out.reshape(B, C, H, W) + x_nchw


if __name__ == "__main__":
    key = jax.random.PRNGKey(0)
    kx, kp, kx2 = jax.random.split(key, 3)

    # Case 1: C=16 (C//8 = 2), N = 16*16 = 256 with 128-wide q/kv tiles ->
    # grid (2, 2, 2), exercising the online-softmax kv loop and q-tiling.
    B, C, H, W = 2, 16, 16, 16
    x = jax.random.normal(kx, (B, C, H, W), jnp.float32)
    params = init_params(kp, C)

    out = jax.block_until_ready(self_attention(x, params, block_q=128, block_kv=128))
    ref = self_attention_ref(x, params)
    assert out.shape == (B, C, H, W)
    # bf16 MXU inputs + approx reciprocal => slightly looser tolerance than pure f32.
    assert jnp.allclose(out, ref, atol=2e-2, rtol=2e-2), "mismatch vs reference (1)"

    # Case 2: awkward spatial size (N = 100 -> padded to 128, masked keys),
    # default generation-aware tile selection.
    H2 = W2 = 10
    x2 = jax.random.normal(kx2, (B, C, H2, W2), jnp.float32)
    out2 = jax.block_until_ready(self_attention(x2, params))
    ref2 = self_attention_ref(x2, params)
    assert out2.shape == (B, C, H2, W2)
    assert jnp.allclose(out2, ref2, atol=2e-2, rtol=2e-2), "mismatch vs reference (2)"

    print("KERNEL_OK")
</pallas_src>

<mosaic_0001>
module attributes {stable_mosaic.version = 11 : i64} {
  func.func @_flash_attn_kernel(%arg0: i32, %arg1: i32, %arg2: i32, %arg3: memref<1x16x128xf32, #tpu.memory_space<vmem>>, %arg4: memref<1x8x128xbf16, #tpu.memory_space<vmem>>, %arg5: memref<1x8x128xbf16, #tpu.memory_space<vmem>>, %arg6: memref<1x24x128xbf16, #tpu.memory_space<vmem>>, %arg7: memref<1x16x128xf32, #tpu.memory_space<vmem>>, %arg8: memref<1x128xf32, #tpu.memory_space<vmem>>, %arg9: memref<1x128xf32, #tpu.memory_space<vmem>>) attributes {dimension_semantics = [#tpu.dimension_semantics<parallel>, #tpu.dimension_semantics<parallel>, #tpu.dimension_semantics<arbitrary>], iteration_bounds = array<i64: 2, 2, 2>, scalar_prefetch = 0 : i64, scratch_operands = 2 : i64, tpu.core_type = #tpu.core_type<tc>, window_params = [{transform_indices = @transform_0, window_bounds = array<i64: 1, 16, 128>}, {transform_indices = @transform_1, window_bounds = array<i64: 1, 8, 128>}, {transform_indices = @transform_2, window_bounds = array<i64: 1, 8, 128>}, {transform_indices = @transform_3, window_bounds = array<i64: 1, 24, 128>}, {transform_indices = @transform_4, window_bounds = array<i64: 1, 16, 128>}]} {
    %c0_i32 = arith.constant 0 : i32
    %0 = arith.cmpi eq, %arg2, %c0_i32 : i32
    %1 = arith.extui %0 : i1 to i32
    %c0_i32_0 = arith.constant 0 : i32
    %2 = arith.cmpi ne, %1, %c0_i32_0 : i32
    scf.if %2 {
      %cst_26 = arith.constant 0xFF800000 : f32
      %39 = vector.broadcast %cst_26 : f32 to vector<1x128xf32>
      %c0_27 = arith.constant 0 : index
      %c0_28 = arith.constant 0 : index
      %40 = vector.load %arg8[%c0_27, %c0_28] : memref<1x128xf32, #tpu.memory_space<vmem>>, vector<1x128xf32>
      tpu.vector_store %arg8[%c0_27, %c0_28], %39 {strides = array<i32>} : memref<1x128xf32, #tpu.memory_space<vmem>>, vector<1x128xf32>,
      %cst_29 = arith.constant 0.000000e+00 : f32
      %41 = vector.broadcast %cst_29 : f32 to vector<1x128xf32>
      %c0_30 = arith.constant 0 : index
      %c0_31 = arith.constant 0 : index
      %42 = vector.load %arg9[%c0_30, %c0_31] : memref<1x128xf32, #tpu.memory_space<vmem>>, vector<1x128xf32>
      tpu.vector_store %arg9[%c0_30, %c0_31], %41 {strides = array<i32>} : memref<1x128xf32, #tpu.memory_space<vmem>>, vector<1x128xf32>,
      %cst_32 = arith.constant 0.000000e+00 : f32
      %43 = vector.broadcast %cst_32 : f32 to vector<16x128xf32>
      %c0_33 = arith.constant 0 : index
      %c0_34 = arith.constant 0 : index
      %c0_35 = arith.constant 0 : index
      %44 = vector.load %arg7[%c0_33, %c0_34, %c0_35] : memref<1x16x128xf32, #tpu.memory_space<vmem>>, vector<1x16x128xf32>
      %45 = vector.shape_cast %44 : vector<1x16x128xf32> to vector<16x128xf32>
      %46 = vector.shape_cast %43 : vector<16x128xf32> to vector<1x16x128xf32>
      tpu.vector_store %arg7[%c0_33, %c0_34, %c0_35], %46 {strides = array<i32>} : memref<1x16x128xf32, #tpu.memory_space<vmem>>, vector<1x16x128xf32>,
    } else {
    }
    %c0 = arith.constant 0 : index
    %c0_1 = arith.constant 0 : index
    %c0_2 = arith.constant 0 : index
    %3 = vector.load %arg5[%c0, %c0_1, %c0_2] : memref<1x8x128xbf16, #tpu.memory_space<vmem>>, vector<1x8x128xbf16>
    %4 = vector.shape_cast %3 : vector<1x8x128xbf16> to vector<8x128xbf16>
    %c0_3 = arith.constant 0 : index
    %c0_4 = arith.constant 0 : index
    %c0_5 = arith.constant 0 : index
    %5 = vector.load %arg4[%c0_3, %c0_4, %c0_5] : memref<1x8x128xbf16, #tpu.memory_space<vmem>>, vector<1x8x128xbf16>
    %6 = vector.shape_cast %5 : vector<1x8x128xbf16> to vector<8x128xbf16>
    %cst = arith.constant dense<0.000000e+00> : vector<128x128xf32>
    %7 = tpu.matmul %4, %6, %cst {dimension_numbers = #tpu.dot_dimension_numbers<[0], [0], [1], [1], [0, 1, 1, 1], [], []>} : vector<8x128xbf16>, vector<8x128xbf16>, vector<128x128xf32> -> vector<128x128xf32>
    %c0_6 = arith.constant 0 : index
    %c0_7 = arith.constant 0 : index
    %8 = vector.load %arg8[%c0_6, %c0_7] : memref<1x128xf32, #tpu.memory_space<vmem>>, vector<1x128xf32>
    %cst_8 = arith.constant dense<0xFF800000> : vector<128xf32>
    %9 = vector.multi_reduction <maximumf>, %7, %cst_8 [0] : vector<128x128xf32> to vector<128xf32>
    %10 = vector.shape_cast %9 : vector<128xf32> to vector<1x128xf32>
    %11 = arith.maximumf %8, %10 : vector<1x128xf32>
    %12 = arith.subf %8, %11 : vector<1x128xf32>
    %13 = math.exp %12 : vector<1x128xf32>
    %14 = vector.broadcast %11 : vector<1x128xf32> to vector<128x128xf32>
    %15 = arith.subf %7, %14 : vector<128x128xf32>
    %16 = math.exp %15 : vector<128x128xf32>
    %17 = arith.truncf %16 : vector<128x128xf32> to vector<128x128xbf16>
    %c0_9 = arith.constant 0 : index
    %c0_10 = arith.constant 0 : index
    %c0_11 = arith.constant 0 : index
    %18 = vector.load %arg6[%c0_9, %c0_10, %c0_11] : memref<1x24x128xbf16, #tpu.memory_space<vmem>>, vector<1x24x128xbf16>
    %19 = vector.shape_cast %18 : vector<1x24x128xbf16> to vector<24x128xbf16>
    %cst_12 = arith.constant dense<0.000000e+00> : vector<24x128xf32>
    %20 = tpu.matmul %19, %17, %cst_12 {dimension_numbers = #tpu.dot_dimension_numbers<[1], [0], [0], [1], [0, 0, 1, 1], [], []>} : vector<24x128xbf16>, vector<128x128xbf16>, vector<24x128xf32> -> vector<24x128xf32>
    %c0_13 = arith.constant 0 : index
    %c0_14 = arith.constant 0 : index
    %21 = vector.load %arg9[%c0_13, %c0_14] : memref<1x128xf32, #tpu.memory_space<vmem>>, vector<1x128xf32>
    %22 = arith.mulf %13, %21 : vector<1x128xf32>
    %23 = vector.extract_strided_slice %20 {offsets = [16, 0], sizes = [1, 128], strides = [1, 1]} : vector<24x128xf32> to vector<1x128xf32>
    %24 = arith.addf %22, %23 : vector<1x128xf32>
    %c0_15 = arith.constant 0 : index
    %c0_16 = arith.constant 0 : index
    %25 = vector.load %arg9[%c0_15, %c0_16] : memref<1x128xf32, #tpu.memory_space<vmem>>, vector<1x128xf32>
    tpu.vector_store %arg9[%c0_15, %c0_16], %24 {strides = array<i32>} : memref<1x128xf32, #tpu.memory_space<vmem>>, vector<1x128xf32>,
    %c0_17 = arith.constant 0 : index
    %c0_18 = arith.constant 0 : index
    %c0_19 = arith.constant 0 : index
    %26 = vector.load %arg7[%c0_17, %c0_18, %c0_19] : memref<1x16x128xf32, #tpu.memory_space<vmem>>, vector<1x16x128xf32>
    %27 = vector.shape_cast %26 : vector<1x16x128xf32> to vector<16x128xf32>
    %28 = vector.broadcast %13 : vector<1x128xf32> to vector<16x128xf32>
    %29 = arith.mulf %28, %27 : vector<16x128xf32>
    %30 = vector.extract_strided_slice %20 {offsets = [0, 0], sizes = [16, 128], strides = [1, 1]} : vector<24x128xf32> to vector<16x128xf32>
    %31 = arith.addf %29, %30 : vector<16x128xf32>
    %c0_20 = arith.constant 0 : index
    %c0_21 = arith.constant 0 : index
    %c0_22 = arith.constant 0 : index
    %32 = vector.load %arg7[%c0_20, %c0_21, %c0_22] : memref<1x16x128xf32, #tpu.memory_space<vmem>>, vector<1x16x128xf32>
    %33 = vector.shape_cast %32 : vector<1x16x128xf32> to vector<16x128xf32>
    %34 = vector.shape_cast %31 : vector<16x128xf32> to vector<1x16x128xf32>
    tpu.vector_store %arg7[%c0_20, %c0_21, %c0_22], %34 {strides = array<i32>} : memref<1x16x128xf32, #tpu.memory_space<vmem>>, vector<1x16x128xf32>,
    %c0_23 = arith.constant 0 : index
    %c0_24 = arith.constant 0 : index
    %35 = vector.load %arg8[%c0_23, %c0_24] : memref<1x128xf32, #tpu.memory_space<vmem>>, vector<1x128xf32>
    tpu.vector_store %arg8[%c0_23, %c0_24], %11 {strides = array<i32>} : memref<1x128xf32, #tpu.memory_space<vmem>>, vector<1x128xf32>,
    %c1_i32 = arith.constant 1 : i32
    %36 = arith.cmpi eq, %arg2, %c1_i32 : i32
    %37 = arith.extui %36 : i1 to i32
    %c0_i32_25 = arith.constant 0 : i32
    %38 = arith.cmpi ne, %37, %c0_i32_25 : i32
    scf.if %38 {
      %c0_26 = arith.constant 0 : index
      %c0_27 = arith.constant 0 : index
      %39 = vector.load %arg9[%c0_26, %c0_27] : memref<1x128xf32, #tpu.memory_space<vmem>>, vector<1x128xf32>
      %40 = tpu.reciprocal %39 {approx = true} : vector<1x128xf32> -> vector<1x128xf32>
      %c0_28 = arith.constant 0 : index
      %c0_29 = arith.constant 0 : index
      %c0_30 = arith.constant 0 : index
      %41 = vector.load %arg7[%c0_28, %c0_29, %c0_30] : memref<1x16x128xf32, #tpu.memory_space<vmem>>, vector<1x16x128xf32>
      %42 = vector.shape_cast %41 : vector<1x16x128xf32> to vector<16x128xf32>
      %43 = vector.broadcast %40 : vector<1x128xf32> to vector<16x128xf32>
      %44 = arith.mulf %42, %43 : vector<16x128xf32>
      %c0_31 = arith.constant 0 : index
      %c0_32 = arith.constant 0 : index
      %c0_33 = arith.constant 0 : index
      %45 = vector.load %arg3[%c0_31, %c0_32, %c0_33] : memref<1x16x128xf32, #tpu.memory_space<vmem>>, vector<1x16x128xf32>
      %46 = vector.shape_cast %45 : vector<1x16x128xf32> to vector<16x128xf32>
      %47 = arith.addf %44, %46 : vector<16x128xf32>
      %c0_34 = arith.constant 0 : index
      %c0_35 = arith.constant 0 : index
      %c0_36 = arith.constant 0 : index
      %48 = vector.load %arg7[%c0_34, %c0_35, %c0_36] : memref<1x16x128xf32, #tpu.memory_space<vmem>>, vector<1x16x128xf32>
      %49 = vector.shape_cast %48 : vector<1x16x128xf32> to vector<16x128xf32>
      %50 = vector.shape_cast %47 : vector<16x128xf32> to vector<1x16x128xf32>
      tpu.vector_store %arg7[%c0_34, %c0_35, %c0_36], %50 {strides = array<i32>} : memref<1x16x128xf32, #tpu.memory_space<vmem>>, vector<1x16x128xf32>,
    } else {
    }
    return
  }
  func.func @transform_0(%arg0: i32, %arg1: i32, %arg2: i32) -> (i32, i32, i32) {
    %c0_i32 = arith.constant 0 : i32
    %c0_i32_0 = arith.constant 0 : i32
    return %arg0, %c0_i32, %arg1 : i32, i32, i32
  }
  func.func @transform_1(%arg0: i32, %arg1: i32, %arg2: i32) -> (i32, i32, i32) {
    %c0_i32 = arith.constant 0 : i32
    %c0_i32_0 = arith.constant 0 : i32
    return %arg0, %c0_i32, %arg1 : i32, i32, i32
  }
  func.func @transform_2(%arg0: i32, %arg1: i32, %arg2: i32) -> (i32, i32, i32) {
    %c0_i32 = arith.constant 0 : i32
    %c0_i32_0 = arith.constant 0 : i32
    return %arg0, %c0_i32, %arg2 : i32, i32, i32
  }
  func.func @transform_3(%arg0: i32, %arg1: i32, %arg2: i32) -> (i32, i32, i32) {
    %c0_i32 = arith.constant 0 : i32
    %c0_i32_0 = arith.constant 0 : i32
    return %arg0, %c0_i32, %arg2 : i32, i32, i32
  }
  func.func @transform_4(%arg0: i32, %arg1: i32, %arg2: i32) -> (i32, i32, i32) {
    %c0_i32 = arith.constant 0 : i32
    %c0_i32_0 = arith.constant 0 : i32
    return %arg0, %c0_i32, %arg1 : i32, i32, i32
  }
}

</mosaic_0001>

<bundles_post_ra>
// kernel: tpu_custom_call.1
= control target key start
LH: loop header
LB: loop body
LE: loop exit
PB: predicated region body
PF: predicated region fallthrough
CT: control target
= control target key end

     0   :  { %s1889_s0 = inlined_call_operand.hbm [shape: f32[2,16,256], index: 0, kind: input, shape index: {}]   ;;  %s1890_s1 = inlined_call_operand.hbm [shape: bf16[2,8,256], index: 1, kind: input, shape index: {}]   ;;  %s1891_s2 = inlined_call_operand.hbm [shape: bf16[2,8,256], index: 2, kind: input, shape index: {}]   ;;  %s1892_s3 = inlined_call_operand.hbm [shape: bf16[2,24,256], index: 3, kind: input, shape index: {}]   ;;  %s1893_s4 = inlined_call_operand.hbm [shape: f32[2,16,256], index: 4, kind: output, shape index: {}]  }
   0x1   :  { %1907 = sst [smem:[#allocation32_spill]] %s1889_s0 }
   0x2   :  { %1908 = sst [smem:[#allocation33_spill]] %s1890_s1 }
   0x3   :  { %1909 = sst [smem:[#allocation34_spill]] %s1893_s4 }
   0x4   :  { %9 = vsyncpa [#allocation5], 0 }
   0x5   :  { %11 = vsyncpa [#allocation5 + $0x1], 0 }
   0x6   :  { %12 = vsyncpa [#allocation8], 0 }
   0x7   :  { %14 = vsyncpa [#allocation8 + $0x1], 0 }
   0x8   :  { %15 = vsyncpa [#allocation11], 0 }
   0x9   :  { %17 = vsyncpa [#allocation11 + $0x1], 0 }
   0xa   :  { %18 = vsyncpa [#allocation6], 0 }
   0xb   :  { %20 = vsyncpa [#allocation6 + $0x1], 0  ;;  %s1467_s15 = smov 0   ;;  %s1469_s16 = smov 0  }
   0xc   :  { %s1471_s17 = smov 0   ;;  %s1473_s18 = smov 0  }
   0xd   :  { %s1475_s19 = smov 0   ;;  %s1477_s20 = smov 0  }
   0xe   :  { %s1479_s21 = smov 0   ;;  %s1481_s22 = smov 0  }
   0xf   :  { %s1483_s23 = smov 0   ;;  %s1485_s24 = smov 0  }
  0x10   :  { %s1487_s25 = smov 0   ;;  %s1489_s26 = smov 0  }
  0x11   :  { %s1491_s27 = smov 0  }
  0x12 LB: > { %1910 = sst [smem:[#allocation18_spill]] %s1389_s18  ;;  %s1533_s28 = sadd.s32 4294967295, %s1425_s27   ;;  %s1425_s27 = sphi %s1491_s27, %s26_s27   ;;  %s1421_s26 = sphi %s1489_s26, %s1964_s26   ;;  %s1417_s25 = sphi %s1487_s25, %s1954_s25   ;;  %s1413_s24 = sphi %s1485_s24, %s1963_s24   ;;  %s1409_s23 = sphi %s1483_s23, %s1962_s23   ;;  %s1405_s22 = sphi %s1481_s22, %s1952_s22   ;;  %s1401_s21 = sphi %s1479_s21, %s1961_s21   ;;  %s1397_s20 = sphi %s1477_s20, %s1951_s20   ;;  %s1393_s19 = sphi %s1475_s19, %s1960_s19   ;;  %s1389_s18 = sphi %s1473_s18, %s1959_s18   ;;  %s1385_s17 = sphi %s1471_s17, %s1958_s17   ;;  %s1381_s16 = sphi %s1469_s16, %s1957_s16   ;;  %s1377_s15 = sphi %s1467_s15, %s1956_s15  }
  0x13   : > { %1911 = sst [smem:[#allocation19_spill]] %s1397_s20  ;;  %s38_s30 = sadd.s32 1, %s1413_s24 }
  0x14   : > { %1912 = sst [smem:[#allocation20_spill]] %s1401_s21  ;;  %s41_s5 = sadd.s32 1, %s1417_s25 }
  0x15   : > { %1913 = sst [smem:[#allocation21_spill]] %s1405_s22  ;;  %p39_p0 = scmp.ge.s32.totalorder %s38_s30, 2 }
  0x16   : > { %1914 = sst [smem:[#allocation22_spill]] %s1409_s23  ;;  %s45_s6 = sadd.s32 1, %s1421_s26 }
  0x17   : > { %1915 = sst [smem:[#allocation23_spill]] %s1417_s25  ;;  %p61_p1 = scmp.ne.s32.totalorder %s1397_s20, %s1393_s19 }
  0x18   : > { %s1966_s30 = smov (%p39_p0, %s38_s30), 0  ;;  %s1968_s5 = smov (!%p39_p0, %s41_s5), %s1417_s25 }
  0x19   : > { %1916 = sst [smem:[#allocation24_spill]] %s1966_s30  ;;  %p62_p2 = scmp.eq.s32.totalorder %s1425_s27, 0 }
  0x1a   : > { %p67_p3 = scmp.ne.s32.totalorder %s1393_s19, %s1389_s18  ;;  %p43_p4 = scmp.ge.s32.totalorder %s1968_s5, 2 }
  0x1b   : > { %p68_p5 = scmp.eq.s32.totalorder %s1533_s28, 0  ;;  %p1554_p6 = por %p62_p2, %p61_p1 }
  0x1c   : > { %s106_s9 = ssub.s32 %s1413_s24, %s1966_s30  ;;  %s1970_s5 = smov (%p43_p4, %s1968_s5), 0 }
  0x1d   : > { %1918 = sst [smem:[#allocation25_spill]] %s1970_s5  ;;  %s1972_s6 = smov (!%p43_p4, %s45_s6), %s1421_s26 }
  0x1e   : > { %s50_s10 = ssub.s32 %s1417_s25, %s1970_s5  ;;  %p1570_p7 = por %p68_p5, %p67_p3 }
  0x1f   : > { %p47_p8 = scmp.ge.s32.totalorder %s1972_s6, 2  ;;  %s110_s12 = sadd.s32 1, %s1385_s17 }
  0x20   : > { %p117_p9 = scmp.ne.s32.totalorder %s1385_s17, %s1381_s16  ;;  %p123_p10 = scmp.ne.s32.totalorder %s1381_s16, %s1377_s15 }
  0x21   : > { %s1974_s6 = smov (%p47_p8, %s1972_s6), 0  ;;  %p177_p13 = scmp.eq.s32.totalorder %s1533_s28, 7 }
  0x22   : > { %1920 = sst [smem:[#allocation26_spill]] %s1974_s6  ;;  %p1583_p11 = por %p117_p9, %p62_p2 }
  0x23   : > { %p1589_p12 = por %p123_p10, %p68_p5  ;;  %s49_s7 = ssub.s32 %s1421_s26, %s1974_s6 }
  0x24   : > { %s51_s15 = sor.u32 %s50_s10, %s49_s7  ;;  %s107_s29 = sor.u32 %s106_s9, %s49_s7 }
  0x25   : > { %s1922_s14 = scalar_select %p1589_p12, 1, 0 }
  0x26   : > { %p52_p0 = scmp.eq.s32.totalorder %s51_s15, 0  ;;  %p108_p4 = scmp.eq.s32.totalorder %s107_s29, 0 }
  0x27   : > { %1923 = sst [smem:[#allocation27_spill]] %s1922_s14  ;;  %p1599_p2 = por %p177_p13, %p61_p1 }
  0x28   : > { %s1926_s30 = sadd.s32 4294967294, %s1425_s27   ;;  %s1927_s4 = sadd.s32 1, %s1397_s20 }
  0x29   : > { %s1924_s5 = scalar_select %p1599_p2, 1, 0 }
  0x2a   : > { %p183_p8 = scmp.eq.s32.totalorder %s1926_s30, 7  ;;  %p1905_p9 = scmp.lt.s32.totalorder %s1425_s27, 8 }
  0x2b   : > { %1925 = sst [smem:[#allocation28_spill]] %s1924_s5  ;;  %s1622_s29 = sand.u32 1, %s1397_s20  }
  0x2c   : > { %s1608_s22 = scalar_select %p52_p0, %s1397_s20, %s1927_s4  }
  0x2d   : > { %s1611_s23 = scalar_select %p108_p4, %s1385_s17, %s110_s12  }
  0x2e   : > { %1928 = sst [smem:[#allocation29_spill]] %s1608_s22  ;;  %p1616_p5 = por %p183_p8, %p67_p3 }
  0x2f   : > { %1929 = sst [smem:[#allocation30_spill]] %s1611_s23  ;;  %s890_s7 = sshll.u32 %s1622_s29, 4 }
  0x30   : > { %s1930_s10 = scalar_select %p1616_p5, 1, 0 }
  0x31   : > { %p1629_p1 = pnand %p1905_p9, %p1554_p6  ;;  %s207_s4 = scalar_lea.vmem [#allocation4], %s890_s7 }
  0x32   : > { %1931 = sst [smem:[#allocation31_spill]] %s1930_s10  ;;  %s215_s9 = sshll.u32 %s207_s4, 4  ;;  %s1634_s9 = int_to_ptr.vmem [resolvable:$true] %s215_s9 }
  0x33   : > { %s225_s12 = sand.u32 1, %s1425_s27   ;;  %s893_s15 = sshll.u32 %s1622_s29, 2 }
  0x34   : > { %s894_s6 = sshll.u32 %s1421_s26, 1  ;;  %s229_s20 = scalar_lea.vmem [#allocation7], %s893_s15 }
  0x35   : > { %s234_s22 = sadd.s32 %s1417_s25, %s894_s6  ;;  %s238_s23 = sshll.u32 %s229_s20, 4  ;;  %s239_s23 = int_to_ptr.vmem [resolvable:$true] %s238_s23 }
  0x36   : > { %s895_s10 = sshll.u32 %s234_s22, 6  ;;  %s1933_s1 = sld [smem:[#allocation33_spill]] }
  0x37   : > { %s1643_s21 = sadd.s32 %s1413_s24, %s894_s6  ;;  %s1645_s14 = scalar_lea.sflag [#allocation8], %s225_s12 }
  0x38   : > { %p1167_p3 = pneg %p1629_p1  ;;  %s1178_s7 = scalar_lea.vmem %s239_s23, 64 }
  0x39   : > { %p1179_p6 = scmp.ne.s32.totalorder %s239_s23, %s1178_s7  ;;  %s1427_s4 = smov [#allocation7]  }
  0x3a   : > { %s1183_s20 = sshll.u32 %s1427_s4, 4  ;;  %s1184_s20 = int_to_ptr.vmem [resolvable:$false] %s1183_s20 }
  0x3b   : > { %p1181_p10 = pnand %p1179_p6, %p1167_p3  ;;  %s1185_s22 = scalar_lea.vmem %s1184_s20, 128 }
  0x3c   : > { %s236_s5 = scalar_lea.hbm %s1933_s1, %s895_s10  ;;  %p1186_p0 = scmp.lt.s32.totalorder %s239_s23, %s1184_s20 }
  0x3d   : > { %p1182_p13 = pneg %p1181_p10  ;;  %p1187_p4 = scmp.lt.s32.totalorder %s1185_s22, %s1178_s7 }
  0x3f   : > { %p1188_p8 = por %p1187_p4, %p1186_p0 }
  0x41   : > { %p1189_p9 = pnand %p1188_p8, %p1182_p13 }
  0x43   : > { %1192 = shalt.err (!%p1189_p9)
}
  0x44   : > { %999 = dma.hbm_to_vmem [thread:$0]  (!%p1629_p1), %s236_s5, 64, %s239_s23, %s1645_s14  }
  0x45   : > { %p1934_p6 = scmp.lt.s32.totalorder %s1425_s27, 8  ;;  %p900_p9 = scmp.ge.s32.totalorder %s1425_s27, 1 }
  0x46   : > { %p285_p13 = scmp.lt.s32.totalorder %s1425_s27, 9  ;;  %s891_s10 = sshll.u32 %s1421_s26, 2 }
  0x47   : > { %p1659_p10 = pnand %p1934_p6, %p1583_p11  ;;  %s212_s12 = sadd.s32 %s1417_s25, %s891_s10 }
  0x48   : > { %p1665_p0 = pnand %p900_p9, %p285_p13  ;;  %s892_s15 = sshll.u32 %s212_s12, 7 }
  0x49   : > { %s1937_s0 = sld [smem:[#allocation32_spill]]  ;;  %s204_s5 = scalar_lea.sflag [#allocation5], %s1622_s29 }
  0x4a   : > { %s1206_s13 = scalar_lea.vmem %s1634_s9, 256  ;;  %s1428_s4 = smov [#allocation4]  }
  0x4b   : > { %p1207_p11 = scmp.ne.s32.totalorder %s1634_s9, %s1206_s13  ;;  %s1211_s20 = sshll.u32 %s1428_s4, 4  ;;  %s1212_s20 = int_to_ptr.vmem [resolvable:$false] %s1211_s20 }
  0x4c   : > { %s1213_s22 = scalar_lea.vmem %s1212_s20, 512  ;;  %p1214_p6 = scmp.lt.s32.totalorder %s1634_s9, %s1212_s20 }
  0x4d   : > { %p1209_p4 = pnand %p1207_p11, %p1167_p3  ;;  %p1215_p9 = scmp.lt.s32.totalorder %s1213_s22, %s1206_s13 }
  0x4f   : > { %s214_s23 = scalar_lea.hbm %s1937_s0, %s892_s15  ;;  %p1210_p8 = pneg %p1209_p4 }
  0x50   : > { %p1216_p13 = por %p1215_p9, %p1214_p6 }
  0x52   : > { %p1217_p5 = pnand %p1216_p13, %p1210_p8 }
  0x54   : > { %1220 = shalt.err (!%p1217_p5)
}
  0x55   : > { %s1429_s10 = smov 256   ;;  %s1430_s29 = smov 128  }
  0x56   : > { %s1431_s12 = smov 8   ;;  %s1686_s15 = sand.u32 1, %s1385_s17  }
  0x57   : > { %996 = dma.hbm_to_vmem [thread:$0]  (!%p1629_p1), %s214_s23, 256, %s1634_s9, %s204_s5, %s1429_s10, %s1430_s29, %s1431_s12  }
  0x58   : > { %s898_s8 = sshll.u32 %s1643_s21, 6  ;;  %s896_s7 = sshll.u32 %s1686_s15, 2 }
  0x59   : > { %s256_s20 = scalar_lea.hbm %s1891_s2, %s898_s8  ;;  %s249_s22 = scalar_lea.vmem [#allocation9], %s896_s7 }
  0x5a   : > { %s258_s0 = sshll.u32 %s249_s22, 4  ;;  %s980_s1 = smul.u32 12, %s1686_s15  ;;  %s259_s0 = int_to_ptr.vmem [resolvable:$true] %s258_s0 }
  0x5b   : > { %s981_s25 = smul.u32 6, %s1421_s26  ;;  %p1223_p5 = pneg %p1659_p10 }
  0x5c   : > { %s1234_s30 = scalar_lea.vmem %s259_s0, 64  ;;  %s1432_s9 = smov [#allocation9]  }
  0x5d   : > { %p1235_p3 = scmp.ne.s32.totalorder %s259_s0, %s1234_s30  ;;  %s1239_s21 = sshll.u32 %s1432_s9, 4  ;;  %s1240_s21 = int_to_ptr.vmem [resolvable:$false] %s1239_s21 }
  0x5e   : > { %s1241_s23 = scalar_lea.vmem %s1240_s21, 128  ;;  %p1242_p4 = scmp.lt.s32.totalorder %s259_s0, %s1240_s21 }
  0x5f   : > { %p1237_p1 = pnand %p1235_p3, %p1223_p5  ;;  %p1243_p8 = scmp.lt.s32.totalorder %s1241_s23, %s1234_s30 }
  0x61   : > { %p1238_p11 = pneg %p1237_p1  ;;  %p1244_p6 = por %p1243_p8, %p1242_p4 }
  0x63   : > { %p1245_p9 = pnand %p1244_p6, %p1238_p11 }
  0x65   : > { %1248 = shalt.err (!%p1245_p9)
}
  0x66   : > { %1002 = dma.hbm_to_vmem [thread:$0]  (!%p1659_p10), %s256_s20, 64, %s259_s0, %s1645_s14  }
  0x67   : > { %s274_s5 = sadd.s32 %s1413_s24, %s981_s25  ;;  %s269_s10 = scalar_lea.vmem [#allocation10], %s980_s1 }
  0x68   : > { %s277_s12 = sshll.u32 %s269_s10, 4  ;;  %s899_s8 = sshll.u32 %s274_s5, 6  ;;  %s278_s12 = int_to_ptr.vmem [resolvable:$true] %s277_s12 }
  0x69   : > { %s276_s4 = scalar_lea.hbm %s1892_s3, %s899_s8  ;;  %s266_s22 = scalar_lea.sflag [#allocation11], %s1686_s15 }
  0x6a   : > { %s1262_s30 = scalar_lea.vmem %s278_s12, 192  ;;  %s1433_s9 = smov [#allocation10]  }
  0x6b   : > { %p1263_p13 = scmp.ne.s32.totalorder %s278_s12, %s1262_s30  ;;  %s1267_s21 = sshll.u32 %s1433_s9, 4  ;;  %s1268_s21 = int_to_ptr.vmem [resolvable:$false] %s1267_s21 }
  0x6c   : > { %s1269_s0 = scalar_lea.vmem %s1268_s21, 384  ;;  %p1270_p11 = scmp.lt.s32.totalorder %s278_s12, %s1268_s21 }
  0x6d   : > { %p1265_p3 = pnand %p1263_p13, %p1223_p5  ;;  %p1271_p4 = scmp.lt.s32.totalorder %s1269_s0, %s1262_s30 }
  0x6f   : > { %p1266_p1 = pneg %p1265_p3  ;;  %p1272_p8 = por %p1271_p4, %p1270_p11 }
  0x71   : > { %p1273_p6 = pnand %p1272_p8, %p1266_p1 }
  0x73   : > { %1276 = shalt.err (!%p1273_p6)
}
  0x74   : > { %s1434_s1 = smov 64   ;;  %s1435_s25 = smov 4  }
  0x75   : > { %1005 = dma.hbm_to_vmem [thread:$0]  (!%p1659_p10), %s276_s4, 192, %s278_s12, %s266_s22, %s1430_s29, %s1434_s1, %s1435_s25  }
  0x76   : > { %289 = sbr.rel (%p1665_p0) target bundleno = 806 (0x326), region = 36  ;;  %s1717_s14 = sand.u32 (!%p1665_p0), 1, %s1393_s19  }
  0x77   : > { %s901_s15 = sshll.u32 (!%p1665_p0), %s1717_s14, 4  ;;  %s292_s20 = scalar_lea.sflag (!%p1665_p0), [#allocation5], %s1717_s14 }
  0x78   : > { %s1721_s23 = scalar_lea.vmem (!%p1665_p0), [#allocation4], %s901_s15 }
  0x7b   : > { %1356 = dma.done.wait (%p1570_p7), %s292_s20, 256  }
  0x7c   : > { %1358 = vsyncadd (%p1570_p7), %s292_s20, 4294967040  ;;  %s300_s18 = sand.u32 1, %s1533_s28   ;;  %s902_s6 = sshll.u32 %s1717_s14, 2 }
  0x7d   : > { %s301_s29 = scalar_lea.sflag [#allocation8], %s300_s18  ;;  %s304_s5 = scalar_lea.vmem [#allocation7], %s902_s6 }
  0x7e   : > { %1360 = dma.done.wait (%p1570_p7), %s301_s29, 64  }
  0x7f   : > { %1362 = vsyncadd (%p1570_p7), %s301_s29, 4294967232  ;;  %s311_s12 = sand.u32 1, %s1381_s16  }
  0x80   : > { %s903_s8 = sshll.u32 %s311_s12, 2 }
  0x81   : > { %s313_s7 = scalar_lea.vmem [#allocation9], %s903_s8 }
  0x82   : > { %1364 = dma.done.wait (%p1589_p12), %s301_s29, 64  }
  0x83   : > { %1366 = vsyncadd (%p1589_p12), %s301_s29, 4294967232  ;;  %s982_s28 = smul.u32 12, %s311_s12  ;;  %s319_s13 = scalar_lea.sflag [#allocation11], %s311_s12 }
  0x85   : > { %s1738_s4 = scalar_lea.vmem [#allocation10], %s982_s28 }
  0x86   : > { %1368 = dma.done.wait (%p1589_p12), %s319_s13, 192  }
  0x87   : > { %1370 = vsyncadd (%p1589_p12), %s319_s13, 4294967104  ;;  %s1744_s11 = scalar_lea.vmem [#allocation12], %s901_s15  ;;  %s1939_s22 = sld [smem:[#allocation20_spill]] }
  0x8d   : > { %p905_p7 = scmp.ne.s32.totalorder %s1939_s22, 0 }
  0x8f   : > { %366 = sbr.rel (%p905_p7) target bundleno = 151 (0x97), region = 56 }
  0x94   : > { %v1436_v0 = vmov -inf   ;;  %v1437_v1 = vmov 0.0  }
  0x95   : > { %367 = vst [vmem:[#allocation2] sm:$0x1] %v1436_v0  ;;  %368 = vst [vmem:[#allocation3] sm:$0x1] %v1437_v1 }
  0x96   : > { %369 = vst [vmem:[%s1744_s11] sm:$0xff] %v1437_v1  ;;  %370 = vst [vmem:[%s1744_s11 + $0x8] sm:$0xff] %v1437_v1 }
  0x97 PF: > { %v371_v2 = vld [vmem:[%s313_s7] sm:$0xf]  ;;  %v372_v3 = vld [vmem:[%s304_s5] sm:$0xf]  ;;  %vm414_vm0 = vcmask 1043456   ;;  %vm389_vm1 = vcmask 64512   ;;  %v542_v47 = vlaneseq }
  0x98   : > { %373 = vxpose.xlu0.c.b16.start.end [1/1] (short) %v371_v2, 128  ;;  %979 = vmatprep.subr.msk.bf16.mxu0 %vm414_vm0, %v372_v3  ;;  %v416_v4 = vsel %vm414_vm0, %v372_v3, 0  ;;  %v1127_v13 = vld [vmem:[%s1738_s4] sm:$0xff]   ;;  %s1940_s30 = sld [smem:[#allocation20_spill]] }
  0x99   : > { %942 = vmatpush3.bf16.msra.mxu0 %v416_v4  ;;  %975 = vmatprep.mubr.bf16.mxu1 %v1127_v13  ;;  %v543_v50 = vshrl.u32 %v542_v47, 7 }
  0x9b   : > { %v1782_v54 = vsub.s32 0, %v543_v50 }
  0x9c   : > { %v515_v52 = vld [vmem:[#allocation2] sm:$0x1] }
  0x9e   : > { %p916_p12 = scmp.ne.s32.totalorder %s1940_s30, 1 }
  0xfa   : > { %v381_v5 = vpop.trf.xlu0 }
  0xfb   : > { %943 = vmatprep.mubr.msk.bf16.mxu0 %vm389_vm1, %v381_v5 }
  0xfe   : > { %v382_v6 = vpop.trf.xlu0 }
  0xff   : > { %944 = vmatmul.mubr.msk.bf16.vlgmr.msra.gmra.mxu0 %vm389_vm1, %v382_v6 }
 0x102   : > { %v383_v7 = vpop.trf.xlu0 }
 0x103   : > { %947 = vmatprep.mubr.msk.bf16.mxu0 %vm389_vm1, %v383_v7 }
 0x106   : > { %v384_v8 = vpop.trf.xlu0 }
 0x107   : > { %948 = vmatmul.mubr.msk.bf16.gmra.mxu0 %vm389_vm1, %v384_v8 }
 0x10a   : > { %v385_v9 = vpop.trf.xlu0 }
 0x10b   : > { %951 = vmatprep.mubr.msk.bf16.mxu0 %vm389_vm1, %v385_v9 }
 0x10e   : > { %v386_v10 = vpop.trf.xlu0 }
 0x10f   : > { %952 = vmatmul.mubr.msk.bf16.gmra.mxu0 %vm389_vm1, %v386_v10 }
 0x112   : > { %v387_v11 = vpop.trf.xlu0 }
 0x113   : > { %955 = vmatprep.mubr.msk.bf16.mxu0 %vm389_vm1, %v387_v11 }
 0x116   : > { %v388_v12 = vpop.trf.xlu0 }
 0x117   : > { %956 = vmatmul.mubr.msk.bf16.gmra.mxu0 %vm389_vm1, %v388_v12 }
 0x1bf   : > { %v1758_v14 = vpop.f32.mrf.mxu0 }
 0x1c1   : > { %v1760_v15 = vpop.f32.mrf.mxu0 }
 0x1c3   : > { %v1762_v16 = vpop.f32.mrf.mxu0 }
 0x1c5   : > { %v1764_v17 = vpop.f32.mrf.mxu0 }
 0x1c7   : > { %v1766_v18 = vpop.f32.mrf.mxu0 }
 0x1c8   : > { %v518_v29 = vmax.f32 %v1758_v14, %v1766_v18 }
 0x1c9   : > { %v1768_v19 = vpop.f32.mrf.mxu0 }
 0x1ca   : > { %v516_v30 = vmax.f32 %v1760_v15, %v1768_v19 }
 0x1cb   : > { %v1770_v20 = vpop.f32.mrf.mxu0 }
 0x1cc   : > { %v519_v27 = vmax.f32 %v1762_v16, %v1770_v20 }
 0x1cd   : > { %v1772_v21 = vpop.f32.mrf.mxu0 }
 0x1ce   : > { %v517_v31 = vmax.f32 %v1764_v17, %v1772_v21 }
 0x1cf   : > { %v953_v22 = vpop.f32.mrf.mxu0 }
 0x1d0   : > { %v522_v34 = vmax.f32 %v518_v29, %v953_v22 }
 0x1d1   : > { %v484_v23 = vpop.f32.mrf.mxu0 }
 0x1d2   : > { %v520_v35 = vmax.f32 %v516_v30, %v484_v23 }
 0x1d3   : > { %v954_v24 = vpop.f32.mrf.mxu0 }
 0x1d4   : > { %v523_v32 = vmax.f32 %v519_v27, %v954_v24 }
 0x1d5   : > { %v487_v25 = vpop.f32.mrf.mxu0 }
 0x1d6   : > { %v521_v36 = vmax.f32 %v517_v31, %v487_v25 }
 0x1d7   : > { %v957_v26 = vpop.f32.mrf.mxu0 }
 0x1d8   : > { %v526_v39 = vmax.f32 %v522_v34, %v957_v26 }
 0x1d9   : > { %v500_v28 = vpop.f32.mrf.mxu0 }
 0x1da   : > { %v524_v40 = vmax.f32 %v520_v35, %v500_v28 }
 0x1db   : > { %v958_v33 = vpop.f32.mrf.mxu0 }
 0x1dc   : > { %v527_v37 = vmax.f32 %v523_v32, %v958_v33 }
 0x1dd   : > { %v503_v38 = vpop.f32.mrf.mxu0 }
 0x1de   : > { %v525_v41 = vmax.f32 %v521_v36, %v503_v38  ;;  %v529_v42 = vmax.f32 %v526_v39, %v527_v37 }
 0x1e0   : > { %v528_v43 = vmax.f32 %v524_v40, %v525_v41 }
 0x1e2   : > { %v530_v44 = vmax.f32 %v528_v43, %v529_v42 }
 0x1e4   : > { %v531_v45 = vrot.slane %v530_v44, 4 }
 0x1e6   : > { %v532_v46 = vmax.f32 %v530_v44, %v531_v45 }
 0x1e8   : > { %v533_v48 = vrot.slane %v532_v46, 2 }
 0x1ea   : > { %v534_v49 = vmax.f32 %v532_v46, %v533_v48 }
 0x1ec   : > { %v535_v51 = vrot.slane %v534_v49, 1 }
 0x1ee   : > { %v536_v53 = vmax.f32 %v534_v49, %v535_v51 }
 0x1f0   : > { %v537_v55 = vmax.f32 %v515_v52, %v536_v53  ;;  %v1128_v53 = vld [vmem:[%s1738_s4 + $0x8] ss:$0 sps:$4 sm:$0xff]  }
 0x1f2   : > { %v538_v56 = vsub.f32 %v515_v52, %v537_v55  ;;  %v545_v57 = vrot.slane %v537_v55, %v1782_v54  ;;  %682 = vst [vmem:[#allocation2] sm:$0x1] %v537_v55  ;;  %v664_v55 = vld [vmem:[#allocation3] sm:$0x1] }
 0x1f4   : > { %v560_v58 = vsub.f32 %v503_v38, %v545_v57  ;;  %v561_v59 = vsub.f32 %v957_v26, %v545_v57  ;;  %v562_v60 = vsub.f32 %v958_v33, %v545_v57  ;;  %v559_v61 = vsub.f32 %v500_v28, %v545_v57 }
 0x1f5   : > { %v557_v62 = vsub.f32 %v953_v22, %v545_v57  ;;  %v558_v2 = vsub.f32 %v954_v24, %v545_v57  ;;  %v555_v4 = vsub.f32 %v484_v23, %v545_v57  ;;  %v556_v6 = vsub.f32 %v487_v25, %v545_v57 }
 0x1f6   : > { %v589_v63 = vmul.f32 1.442695, %v560_v58  ;;  %v591_v0 = vmul.f32 1.442695, %v561_v59  ;;  %v593_v1 = vmul.f32 1.442695, %v562_v60  ;;  %v553_v8 = vsub.f32 %v1766_v18, %v545_v57 }
 0x1f7   : > { %v587_v3 = vmul.f32 1.442695, %v559_v61  ;;  %v583_v5 = vmul.f32 1.442695, %v557_v62  ;;  %v585_v7 = vmul.f32 1.442695, %v558_v2  ;;  %v554_v9 = vsub.f32 %v1770_v20, %v545_v57 }
 0x1f8   : > { %1129 = vpow2.f32 %v589_v63  ;;  %v579_v10 = vmul.f32 1.442695, %v555_v4  ;;  %v549_v11 = vsub.f32 %v1758_v14, %v545_v57  ;;  %v581_v12 = vmul.f32 1.442695, %v556_v6  ;;  %v669_v62 = vld [vmem:[%s1744_s11 + $0x8] sm:$0xff] }
 0x1f9   : > { %1131 = vpow2.f32 %v591_v0  ;;  %v550_v13 = vsub.f32 %v1762_v16, %v545_v57  ;;  %v575_v22 = vmul.f32 1.442695, %v553_v8  ;;  %v547_v23 = vsub.f32 %v1760_v15, %v545_v57 }
 0x1fa   : > { %1133 = vpow2.f32 %v593_v1  ;;  %v577_v24 = vmul.f32 1.442695, %v554_v9  ;;  %v548_v25 = vsub.f32 %v1764_v17, %v545_v57  ;;  %v567_v26 = vmul.f32 1.442695, %v549_v11 }
 0x1fb   : > { %1135 = vpow2.f32 %v587_v3  ;;  %v551_v18 = vsub.f32 %v1768_v19, %v545_v57  ;;  %v569_v20 = vmul.f32 1.442695, %v550_v13  ;;  %v552_v14 = vsub.f32 %v1772_v21, %v545_v57 }
 0x1fc   : > { %1137 = vpow2.f32 %v583_v5  ;;  %v563_v27 = vmul.f32 1.442695, %v547_v23  ;;  %v565_v28 = vmul.f32 1.442695, %v548_v25  ;;  %v539_v16 = vmul.f32 1.442695, %v538_v56 }
 0x1fd   : > { %1139 = vpow2.f32 %v585_v7  ;;  %v571_v30 = vmul.f32 1.442695, %v551_v18  ;;  %v573_v31 = vmul.f32 1.442695, %v552_v14  ;;  %v668_v56 = vld [vmem:[%s1744_s11] sm:$0xff] }
 0x1fe   : > { %1141 = vpow2.f32 %v579_v10 }
 0x1ff   : > { %1143 = vpow2.f32 %v581_v12 }
 0x200   : > { %1145 = vpow2.f32 %v575_v22 }
 0x201   : > { %1147 = vpow2.f32 %v577_v24 }
 0x202   : > { %1149 = vpow2.f32 %v567_v26 }
 0x203   : > { %1151 = vpow2.f32 %v569_v20 }
 0x204   : > { %1153 = vpow2.f32 %v563_v27 }
 0x205   : > { %v1130_v29 = vpop.eup %1129  ;;  %1155 = vpow2.f32 %v565_v28 }
 0x206   : > { %v1132_v15 = vpop.eup %1131  ;;  %1157 = vpow2.f32 %v539_v16 }
 0x207   : > { %v1134_v17 = vpop.eup %1133  ;;  %1159 = vpow2.f32 %v571_v30 }
 0x208   : > { %v1136_v32 = vpop.eup %1135  ;;  %v602_v33 = vpack.c.bf16 %v1134_v17, %v1132_v15  ;;  %1161 = vpow2.f32 %v573_v31 }
 0x209   : > { %v1138_v19 = vpop.eup %1137  ;;  %v601_v21 = vpack.c.bf16 %v1130_v29, %v1136_v32 }
 0x20a   : > { %959 = vmatprep.subr.bf16.mxu1 %v602_v33  ;;  %v1140_v34 = vpop.eup %1139 }
 0x20b   : > { %960 = vmatpush3.bf16.msra.mxu1 %v602_v33  ;;  %v1142_v35 = vpop.eup %1141  ;;  %v600_v37 = vpack.c.bf16 %v1140_v34, %v1138_v19 }
 0x20c   : > { %961 = vmatprep.subr.bf16.mxu1 %v601_v21  ;;  %v1144_v36 = vpop.eup %1143 }
 0x20d   : > { %v1146_v38 = vpop.eup %1145  ;;  %v599_v42 = vpack.c.bf16 %v1144_v36, %v1142_v35 }
 0x20e   : > { %v1148_v39 = vpop.eup %1147 }
 0x20f   : > { %962 = vmatpush3.bf16.msra.mxu1 %v601_v21  ;;  %v1150_v40 = vpop.eup %1149  ;;  %v598_v49 = vpack.c.bf16 %v1148_v39, %v1146_v38 }
 0x210   : > { %963 = vmatprep.subr.bf16.mxu1 %v600_v37  ;;  %v1152_v41 = vpop.eup %1151 }
 0x211   : > { %v1154_v43 = vpop.eup %1153  ;;  %v596_v44 = vpack.c.bf16 %v1152_v41, %v1150_v40 }
 0x212   : > { %v1156_v45 = vpop.eup %1155 }
 0x213   : > { %964 = vmatpush3.bf16.msra.mxu1 %v600_v37  ;;  %v1158_v46 = vpop.eup %1157  ;;  %v595_v47 = vpack.c.bf16 %v1156_v45, %v1154_v43 }
 0x214   : > { %965 = vmatprep.subr.bf16.mxu1 %v599_v42  ;;  %v1160_v48 = vpop.eup %1159  ;;  %v674_v50 = vrot.slane %v1158_v46, %v1782_v54  ;;  %v665_v57 = vmul.f32 %v1158_v46, %v664_v55 }
 0x215   : > { %v1162_v51 = vpop.eup %1161 }
 0x216   : > { %v597_v52 = vpack.c.bf16 %v1162_v51, %v1160_v48  ;;  %v676_v60 = vmul.f32 %v674_v50, %v668_v56  ;;  %v677_v1 = vmul.f32 %v674_v50, %v669_v62 }
 0x217   : > { %966 = vmatpush3.bf16.msra.mxu1 %v599_v42 }
 0x218   : > { %967 = vmatprep.subr.bf16.mxu1 %v598_v49 }
 0x21b   : > { %968 = vmatpush3.bf16.msra.mxu1 %v598_v49 }
 0x21c   : > { %969 = vmatprep.subr.bf16.mxu1 %v597_v52 }
 0x21f   : > { %970 = vmatpush3.bf16.msra.mxu1 %v597_v52 }
 0x220   : > { %971 = vmatprep.subr.bf16.mxu1 %v596_v44 }
 0x223   : > { %972 = vmatpush3.bf16.msra.mxu1 %v596_v44 }
 0x224   : > { %973 = vmatprep.subr.bf16.mxu1 %v595_v47 }
 0x227   : > { %974 = vmatpush3.bf16.msra.mxu1 %v595_v47 }
 0x22a   : > { %976 = vmatmul.mubr.bf16.vlgmr.msra.gmra.mxu1 %v1128_v53 }
 0x2ea   : > { %v977_v58 = vpop.f32.mrf.mxu1 }
 0x2eb   : > { %v666_v59 = vadd.f32 %v977_v58, %v665_v57 }
 0x2ec   : > { %v650_v61 = vpop.f32.mrf.mxu1 }
 0x2ed   : > { %667 = vst [vmem:[#allocation3] sm:$0x1] %v666_v59  ;;  %v678_v63 = vadd.f32 %v676_v60, %v650_v61 }
 0x2ee   : > { %v978_v0 = vpop.f32.mrf.mxu1 }
 0x2ef   : > { %680 = vst [vmem:[%s1744_s11] sm:$0xff] %v678_v63  ;;  %686 = sbr.rel (%p916_p12) target bundleno = 778 (0x30a), region = 60 }
 0x2f0   : > { %v653_v2 = vpop.f32.mrf.mxu1 }
 0x2f1   : > { %v679_v3 = vadd.f32 %v677_v1, %v653_v2 }
 0x2f3   : > { %681 = vst [vmem:[%s1744_s11 + $0x8] sm:$0xff] %v679_v3 }
 0x2f4   : > { %v687_v4 = vld [vmem:[#allocation3] sm:$0x1]  ;;  %v699_v9 = vld [vmem:[%s1721_s23] sm:$0xff] }
 0x2f5   : > { %1163 = vrcp.f32 %v687_v4  ;;  %v700_v10 = vld [vmem:[%s1721_s23 + $0x8] sm:$0xff] }
 0x2f6   : > { %v689_v6 = vld [vmem:[%s1744_s11] sm:$0xff] }
 0x2fa   : > { %v690_v7 = vld [vmem:[%s1744_s11 + $0x8] sm:$0xff] }
 0x302   : > { %v1164_v5 = vpop.eup %1163 }
 0x303   : > { %v695_v8 = vrot.slane %v1164_v5, %v1782_v54 }
 0x305   : > { %v697_v11 = vmul.f32 %v695_v8, %v689_v6  ;;  %v698_v12 = vmul.f32 %v695_v8, %v690_v7 }
 0x307   : > { %v701_v13 = vadd.f32 %v699_v9, %v697_v11  ;;  %v702_v22 = vadd.f32 %v700_v10, %v698_v12 }
 0x309   : > { %703 = vst [vmem:[%s1744_s11] sm:$0xff] %v701_v13  ;;  %704 = vst [vmem:[%s1744_s11 + $0x8] sm:$0xff] %v702_v22 }
 0x30a PF: > { %s1941_s9 = sld [smem:[#allocation22_spill]]  ;;  %s720_s15 = sshll.u32 %s1744_s11, 4  ;;  %s1810_s15 = int_to_ptr.vmem [resolvable:$true] %s720_s15 }
 0x30b   : > { %s1942_s21 = sld [smem:[#allocation21_spill]]  ;;  %s706_s5 = scalar_lea.sflag [#allocation6], %s1717_s14 }
 0x30c   : > { %s1944_s6 = sld [smem:[#allocation34_spill]]  ;;  %s1277_s10 = scalar_lea.vmem %s1810_s15, 256 }
 0x30d   : > { %p1278_p10 = scmp.ne.s32.totalorder %s1810_s15, %s1277_s10  ;;  %s1438_s12 = smov [#allocation12]  }
 0x30e   : > { %s1281_s8 = sshll.u32 %s1438_s12, 4  ;;  %s1282_s8 = int_to_ptr.vmem [resolvable:$false] %s1281_s8 }
 0x30f   : > { %p1279_p0 = pnand %p1278_p10, %p1599_p2  ;;  %s1283_s7 = scalar_lea.vmem %s1282_s8, 512 }
 0x310   : > { %s918_s1 = sshll.u32 %s1941_s9, 2  ;;  %p1284_p9 = scmp.lt.s32.totalorder %s1810_s15, %s1282_s8 }
 0x311   : > { %s717_s25 = sadd.s32 %s1942_s21, %s918_s1  ;;  %p1280_p5 = pneg %p1279_p0 }
 0x312   : > { %s919_s20 = sshll.u32 %s717_s25, 7  ;;  %p1285_p13 = scmp.lt.s32.totalorder %s1283_s7, %s1277_s10 }
 0x313   : > { %s1815_s29 = scalar_lea.hbm %s1944_s6, %s919_s20 }
 0x314   : > { %p1286_p3 = por %p1285_p13, %p1284_p9 }
 0x316   : > { %p1287_p1 = pnand %p1286_p3, %p1280_p5 }
 0x318   : > { %1290 = shalt.err (!%p1287_p1)
}
 0x319   : > { %s1291_s28 = scalar_lea.hbm %s1815_s29, 256  ;;  %s1295_s11 = scalar_lea.hbm %s1944_s6, 1024 }
 0x31a   : > { %p1292_p11 = scmp.ne.s32.totalorder %s1815_s29, %s1291_s28  ;;  %p1296_p6 = scmp.lt.s32.totalorder %s1815_s29, %s1944_s6 }
 0x31b   : > { %p1297_p7 = scmp.lt.s32.totalorder %s1295_s11, %s1291_s28 }
 0x31c   : > { %p1293_p4 = pnand %p1292_p11, %p1599_p2 }
 0x31d   : > { %p1298_p12 = por %p1297_p7, %p1296_p6 }
 0x31e   : > { %p1294_p8 = pneg %p1293_p4 }
 0x320   : > { %p1299_p10 = pnand %p1298_p12, %p1294_p8 }
 0x322   : > { %1302 = shalt.err (!%p1299_p10)
}
 0x323   : > { %s1439_s9 = smov 128   ;;  %s1440_s21 = smov 256  }
 0x324   : > { %s1441_s1 = smov 8  }
 0x325   : > { %991 = dma.vmem_to_hbm [thread:$0]  (%p1599_p2), %s1810_s15, 256, %s1815_s29, %s706_s5, %s1439_s9, %s1440_s21, %s1441_s1  }
 0x326 PF: > { %s1945_s25 = sld [smem:[#allocation18_spill]]  ;;  %p1011_p0 = scmp.ge.s32.totalorder %s1425_s27, 2 }
 0x327   : > { %s1946_s20 = sld [smem:[#allocation31_spill]] }
 0x32c   : > { %s735_s18 = sand.u32 1, %s1945_s25  }
 0x32d   : > { %p1947_p5 = scmp.ne.s32.totalorder %s1946_s20, 0  ;;  %s736_s23 = scalar_lea.sflag [#allocation6], %s735_s18 }
 0x32f   : > { %p1007_p9 = pnand %p1011_p0, %p1947_p5 }
 0x331   : > { %p1008_p13 = pneg %p1007_p9 }
 0x333   : > { %1372 = dma.done.wait (%p1008_p13), %s736_s23, 256  }
 0x334   : > { %1374 = vsyncadd (%p1008_p13), %s736_s23, 4294967040  ;;  %s26_s27 = sadd.s32 1, %s1425_s27   ;;  %s1949_s14 = sld [smem:[#allocation30_spill]] }
 0x335   : > { %p1845_p3 = scmp.ge.s32.totalorder %s26_s27, 10   ;;  %s1950_s0 = sld [smem:[#allocation19_spill]] }
 0x336   : > { %s1951_s20 = sld [smem:[#allocation29_spill]]  ;;  %s1956_s15 = smov %s1381_s16 }
 0x337   : > { %s1952_s22 = sld [smem:[#allocation23_spill]]  ;;  %s1957_s16 = smov %s1385_s17 }
 0x338   : > { %s1953_s29 = sld [smem:[#allocation24_spill]]  ;;  %s1959_s18 = smov %s1393_s19 }
 0x339   : > { %s1954_s25 = sld [smem:[#allocation25_spill]]  ;;  %s1961_s21 = smov %s1413_s24 }
 0x33a   : > { %s1955_s5 = sld [smem:[#allocation26_spill]]  ;;  %s1958_s17 = smov %s1949_s14 }
 0x33b   : > { %s1960_s19 = smov %s1950_s0  ;;  %s1962_s23 = smov %s1421_s26 }
 0x33c   :  { %25 = sbr.rel (!%p1845_p3) target bundleno = 18 (0x12), region = 126 }
 0x33e   : > { %s1963_s24 = smov %s1953_s29 }
 0x340   : > { %s1964_s26 = smov %s1955_s5 }
 0x341   :  { %741 = vsyncpa [#allocation5], 1 }
 0x342   :  { %743 = vsyncpa [#allocation5 + $0x1], 1 }
 0x343   :  { %744 = vsyncpa [#allocation8], 1 }
 0x344   :  { %746 = vsyncpa [#allocation8 + $0x1], 1 }
 0x345   :  { %747 = vsyncpa [#allocation11], 1 }
 0x346   :  { %749 = vsyncpa [#allocation11 + $0x1], 1 }
 0x347   :  { %750 = vsyncpa [#allocation6], 1 }
 0x348   :  { %752 = vsyncpa [#allocation6 + $0x1], 1 }

</bundles_post_ra>
